<compile_context>
chip_gen: v5e
topology: v5e:2x2
jax: 0.10.0
libtpu: 0.0.40
codegen_flags: <defaults>
</compile_context>

<pallas_src>
import jax
import jax.numpy as jnp
from jax.experimental import pallas as pl
from jax.experimental.pallas import tpu as pltpu


def _build_pe_table(max_seq: int, max_dim: int) -> jnp.ndarray:
    """Sinusoidal PE table matching the PyTorch module.

    radian[p, i] = p / 10000 ** (2 * (i // 2) / max_dim)
    even columns -> sin(radian), odd columns -> cos(radian)
    Returns shape (max_seq, max_dim), float32.
    """
    position = jnp.arange(max_seq, dtype=jnp.float32)[:, None]   # (S, 1)
    indices = jnp.arange(max_dim, dtype=jnp.float32)[None, :]    # (1, D)
    numerator = 2.0 * jnp.floor(indices / 2.0)
    angles = 1.0 / jnp.power(10000.0, numerator / float(max_dim))
    radian = position * angles                                    # (S, D)

    result = jnp.zeros_like(radian, dtype=jnp.float32)
    result = result.at[:, 0::2].set(jnp.sin(radian[:, 0::2]))
    result = result.at[:, 1::2].set(jnp.cos(radian[:, 1::2]))
    # TODO(synk): result.requires_grad = True has no forward-pass equivalent here.
    return result


def _pe_add_kernel(x_ref, pe_ref, o_ref):
    # x_ref: (Bt, Ct), pe_ref: (1, Ct) -> broadcast add over the sublane (batch) axis.
    o_ref[...] = x_ref[...] + pe_ref[...]


def _pick_aligned_tile(total: int, align: int, budget_elems: int, max_search: int = 64) -> int:
    """Largest tile <= budget_elems that is a multiple of `align`.

    Prefers an exact divisor of `total` (every tile unmasked); falls back to a plain
    aligned tile (Pallas masks the ragged edge tile), or the full extent if it fits.
    """
    if total <= budget_elems:
        return total
    tile = max(align, (budget_elems // align) * align)
    tile = min(tile, total)
    cand = tile
    for _ in range(max_search):           # bounded trace-time search for a divisor
        if total % cand == 0:
            return cand
        cand -= align
        if cand < align:
            break
    return tile


def _choose_tiles(B: int, F: int, itemsize: int, target_bytes: int):
    """Pick (row_tile, col_tile) obeying the (8, 128) block rule, ~target_bytes/block."""
    # Lane tile: budget one block assuming >=8 sublanes so the whole block stays under
    # target_bytes; never below one full 128-lane vreg row.
    col_budget = max(128, target_bytes // (8 * itemsize))
    ct = _pick_aligned_tile(F, 128, col_budget)
    # Sublane tile: fill the remaining byte budget with rows (multiple of 8).
    rows_budget = max(1, target_bytes // (ct * itemsize))
    if B <= 8 or B <= rows_budget:
        bt = B
    else:
        bt = _pick_aligned_tile(B, 8, rows_budget)
    return bt, ct


def positional_encoding_forward(
    x: jnp.ndarray,
    pe_table: jnp.ndarray,
    *,
    donate_x: bool = False,
    target_tile_bytes: int = 1 << 20,  # ~1 MiB x-blocks: ~85%+ of HBM roofline, VMEM-safe
) -> jnp.ndarray:
    """x: (B, S, D); pe_table: (max_seq, D). Returns x + pe_table[None, :S, :]."""
    B, S, D = x.shape
    max_seq, d_pe = pe_table.shape
    assert D == d_pe, "hidden dim mismatch between x and PE table"
    assert S <= max_seq, "sequence length exceeds max_seq of the PE table"

    F = S * D
    x2 = x.reshape(B, F)                                   # lane-dense flatten (free view)
    pe2 = pe_table[:S].astype(x.dtype).reshape(1, F)       # tiny table slice + cast

    itemsize = jnp.dtype(x.dtype).itemsize
    bt, ct = _choose_tiles(B, F, itemsize, target_tile_bytes)

    # Batch axis innermost (last grid dim): the PE block index (0, c) is constant across
    # consecutive steps -> PE tile stays resident in VMEM (no re-DMA per batch step).
    grid = (pl.cdiv(F, ct), pl.cdiv(B, bt))

    out = pl.pallas_call(
        _pe_add_kernel,
        out_shape=jax.ShapeDtypeStruct((B, F), x.dtype),
        grid_spec=pl.GridSpec(
            grid=grid,
            in_specs=[
                pl.BlockSpec((bt, ct), lambda c, b: (b, c)),   # x
                pl.BlockSpec((1, ct), lambda c, b: (0, c)),    # pe (batch-invariant)
            ],
            out_specs=pl.BlockSpec((bt, ct), lambda c, b: (b, c)),
        ),
        compiler_params=pltpu.CompilerParams(
            dimension_semantics=("parallel", "parallel"),
        ),
        input_output_aliases=({0: 0} if donate_x else {}),
    )(x2, pe2)

    return out.reshape(B, S, D)


if __name__ == "__main__":
    max_dim = 32   # hidden size D
    max_seq = 16   # maximum sequence length
    batch, seq = 2, 8

    pe_table = _build_pe_table(max_seq, max_dim)           # (16, 32)

    key = jax.random.PRNGKey(0)
    x = jax.random.normal(key, (batch, seq, max_dim), dtype=jnp.float32)

    out = positional_encoding_forward(x, pe_table)
    out = jax.block_until_ready(out)

    ref = x + pe_table[None, :seq, :]
    assert out.shape == (batch, seq, max_dim)
    assert jnp.allclose(out, ref, atol=1e-6), "mismatch vs reference (single-tile path)"

    # Second check: force a multi-tile grid (several column tiles) to exercise the tiled
    # index maps and the PE VMEM-residency path on a slightly larger (still small) shape.
    x2 = jax.random.normal(jax.random.PRNGKey(0), (4, max_seq, max_dim), dtype=jnp.float32)
    out2 = jax.block_until_ready(
        positional_encoding_forward(x2, pe_table, target_tile_bytes=1024)
    )
    ref2 = x2 + pe_table[None, :max_seq, :]
    assert jnp.allclose(out2, ref2, atol=1e-6), "mismatch vs reference (tiled path)"

    print("KERNEL_OK")
</pallas_src>

<mosaic_0001>
module attributes {stable_mosaic.version = 11 : i64} {
  func.func @_pe_add_kernel(%arg0: i32, %arg1: i32, %arg2: memref<2x256xf32, #tpu.memory_space<vmem>>, %arg3: memref<1x256xf32, #tpu.memory_space<vmem>>, %arg4: memref<2x256xf32, #tpu.memory_space<vmem>>) attributes {dimension_semantics = [#tpu.dimension_semantics<parallel>, #tpu.dimension_semantics<parallel>], iteration_bounds = array<i64: 1, 1>, scalar_prefetch = 0 : i64, scratch_operands = 0 : i64, tpu.core_type = #tpu.core_type<tc>, window_params = [{transform_indices = @transform_0, window_bounds = array<i64: 2, 256>}, {transform_indices = @transform_1, window_bounds = array<i64: 1, 256>}, {transform_indices = @transform_2, window_bounds = array<i64: 2, 256>}]} {
    %c0 = arith.constant 0 : index
    %c0_0 = arith.constant 0 : index
    %0 = vector.load %arg2[%c0, %c0_0] : memref<2x256xf32, #tpu.memory_space<vmem>>, vector<2x256xf32>
    %c0_1 = arith.constant 0 : index
    %c0_2 = arith.constant 0 : index
    %1 = vector.load %arg3[%c0_1, %c0_2] : memref<1x256xf32, #tpu.memory_space<vmem>>, vector<1x256xf32>
    %2 = vector.broadcast %1 : vector<1x256xf32> to vector<2x256xf32>
    %3 = arith.addf %0, %2 : vector<2x256xf32>
    %c0_3 = arith.constant 0 : index
    %c0_4 = arith.constant 0 : index
    %4 = vector.load %arg4[%c0_3, %c0_4] : memref<2x256xf32, #tpu.memory_space<vmem>>, vector<2x256xf32>
    tpu.vector_store %arg4[%c0_3, %c0_4], %3 {strides = array<i32>} : memref<2x256xf32, #tpu.memory_space<vmem>>, vector<2x256xf32>,
    return
  }
  func.func @transform_0(%arg0: i32, %arg1: i32) -> (i32, i32) {
    %c0_i32 = arith.constant 0 : i32
    return %arg1, %arg0 : i32, i32
  }
  func.func @transform_1(%arg0: i32, %arg1: i32) -> (i32, i32) {
    %c0_i32 = arith.constant 0 : i32
    %c0_i32_0 = arith.constant 0 : i32
    return %c0_i32, %arg0 : i32, i32
  }
  func.func @transform_2(%arg0: i32, %arg1: i32) -> (i32, i32) {
    %c0_i32 = arith.constant 0 : i32
    return %arg1, %arg0 : i32, i32
  }
}

</mosaic_0001>

<bundles_post_ra>
// kernel: tpu_custom_call.1
= control target key start
LH: loop header
LB: loop body
LE: loop exit
PB: predicated region body
PF: predicated region fallthrough
CT: control target
= control target key end

     0   :  { %7 = vsyncpa [#allocation3], 0  ;;  %s177_s0 = inlined_call_operand.hbm [shape: f32[2,256], index: 0, kind: input, shape index: {}]   ;;  %s178_s1 = inlined_call_operand.hbm [shape: f32[1,256], index: 1, kind: input, shape index: {}]   ;;  %s179_s2 = inlined_call_operand.hbm [shape: f32[2,256], index: 2, kind: output, shape index: {}]  }
   0x1   :  { %8 = vsyncpa [#allocation6], 0 }
   0x2   :  { %9 = vsyncpa [#allocation4], 0  ;;  %s15_s11 = sshll.u32 %s177_s0, 4  ;;  %s150_s12 = smov [#allocation2]   ;;  %s16_s11 = int_to_ptr.hbm [resolvable:$true] %s15_s11 }
   0x3   :  { %s17_s13 = sshll.u32 %s150_s12, 4  ;;  %s26_s16 = sshll.u32 %s178_s1, 4  ;;  %s18_s13 = int_to_ptr.vmem [resolvable:$true] %s17_s13  ;;  %s27_s16 = int_to_ptr.hbm [resolvable:$true] %s26_s16 }
   0x4   :  { %20 = dma.hbm_to_vmem [thread:$0]  %s16_s11, 64, %s18_s13, [#allocation3]  }
   0x5   :  { %s151_s17 = smov [#allocation5]  }
   0x6   :  { %s28_s18 = sshll.u32 %s151_s17, 4  ;;  %s29_s18 = int_to_ptr.vmem [resolvable:$true] %s28_s18 }
   0x7   :  { %31 = dma.hbm_to_vmem [thread:$0]  %s27_s16, 32, %s29_s18, [#allocation6]  }
   0x8   :  { %144 = dma.done.wait [#allocation3], 64  }
   0x9   :  { %145 = vsyncadd [#allocation3], 4294967232 }
   0xa   :  { %146 = dma.done.wait [#allocation6], 32  }
   0xb   :  { %147 = vsyncadd [#allocation6], 4294967264  ;;  %v41_v0 = vld [vmem:[#allocation5] sm:$0x3]  ;;  %vm46_vm0 = vcmask 1041408   ;;  %s152_s0 = smov [#allocation7]  }
   0xc   :  { %v43_v1 = vperm.slane %v41_v0, 0  ;;  %v44_v2 = vperm.slane %v41_v0, 1  ;;  %v40_v3 = vld [vmem:[#allocation2] sm:$0xf]  ;;  %s56_s19 = sshll.u32 %s152_s0, 4  ;;  %s58_s21 = sshll.u32 %s179_s2, 4  ;;  %s57_s19 = int_to_ptr.vmem [resolvable:$true] %s56_s19  ;;  %s59_s21 = int_to_ptr.hbm [resolvable:$true] %s58_s21 }
   0xe   :  { %v45_v4 = vrot.slane %v44_v2, 6 }
  0x10   :  { %v47_v5 = vsel %vm46_vm0, %v43_v1, %v45_v4 }
  0x11   :  { %v49_v6 = vadd.f32 %v47_v5, %v40_v3 }
  0x13   :  { %50 = vst [vmem:[#allocation7] sm:$0xf] %v49_v6 }
  0x14   :  { %61 = dma.vmem_to_hbm [thread:$0]  %s57_s19, 64, %s59_s21, [#allocation4]  }
  0x15   :  { %148 = dma.done.wait [#allocation4], 64  }
  0x16   :  { %149 = vsyncadd [#allocation4], 4294967232 }
  0x17   :  { %66 = vsyncpa [#allocation3], 1 }
  0x18   :  { %67 = vsyncpa [#allocation6], 1 }
  0x19   :  { %68 = vsyncpa [#allocation4], 1 }

</bundles_post_ra>
